<compile_context>
chip_gen: v7x
topology: tpu7x:2x2x1
jax: 0.10.0
libtpu: 0.0.40
codegen_flags: <defaults>
</compile_context>

<pallas_src>
import jax
import jax.numpy as jnp
from jax.experimental import pallas as pl
from jax.experimental.pallas import tpu as pltpu

POOL = 4


def _relu_pool_kernel(x_ref, p_ref, o_ref):
    # x_ref: (row_blk, H*W)     rows = flattened (n, c), lanes = flattened (h, w)
    # p_ref: (H*W, Hp*Wp)       combined 2-D pooling matrix (carries the 1/16)
    # o_ref: (row_blk, Hp*Wp)
    x = jnp.maximum(x_ref[...], 0.0)                              # relu on VPU
    o_ref[...] = jnp.dot(
        x, p_ref[...], preferred_element_type=jnp.float32
    ).astype(o_ref.dtype)                                          # pool on MXU


def _pick_row_block(rows, row_bytes, target_bytes=4 << 20):
    """Largest multiple-of-8 divisor of `rows` whose input block stays <= target."""
    if rows % 8 != 0:
        return rows                     # tiny / odd inputs: single full block
    best = 8
    d = 8
    while d <= rows:
        if rows % d == 0 and d * row_bytes <= target_bytes:
            best = d
        d += 8
    return best


def reshape1_forward(x):
    """x: (N, C, H, W). Returns (N, C*(H//4)*(W//4)), matching Reshape1.forward."""
    N, C, H, W = x.shape
    Hp, Wp = H // POOL, W // POOL
    HW, HpWp = H * W, Hp * Wp
    rows = N * C

    # Combined pooling matrix: P[h*W + w, hp*Wp + wp] = 1/16 iff
    # (h//4, w//4) == (hp, wp).  Rows with h >= Hp*4 or w >= Wp*4 are zero,
    # which reproduces avg_pool2d's drop-remainder semantics.
    rh = jnp.arange(HW) // W
    rw = jnp.arange(HW) % W
    ch = jnp.arange(HpWp) // Wp
    cw = jnp.arange(HpWp) % Wp
    pool_mat = (
        ((rh[:, None] // POOL) == ch[None, :])
        & ((rw[:, None] // POOL) == cw[None, :])
    ).astype(x.dtype) / float(POOL * POOL)

    # Free row-major view: rows = (n, c), lanes = (h, w)  ->  lane-dense input.
    x2d = x.reshape(rows, HW)

    itemsize = jnp.dtype(x.dtype).itemsize
    row_blk = _pick_row_block(rows, HW * itemsize)
    grid = (rows // row_blk,)

    # Explicit scoped-VMEM budget: double-buffered in/out blocks + resident
    # pool matrix + headroom (stays well inside v7x's 64 MiB physical VMEM,
    # and lifts v5e's 16 MiB scoped default when blocks are large).
    vmem_need = (2 * row_blk * (HW + HpWp) + 2 * HW * HpWp) * itemsize
    vmem_limit = int(min(64 << 20, max(vmem_need + (4 << 20), 16 << 20)))

    pooled = pl.pallas_call(
        _relu_pool_kernel,
        out_shape=jax.ShapeDtypeStruct((rows, HpWp), x.dtype),
        grid=grid,
        in_specs=[
            pl.BlockSpec((row_blk, HW), lambda i: (i, 0)),
            pl.BlockSpec((HW, HpWp), lambda i: (0, 0)),   # resident across grid
        ],
        out_specs=pl.BlockSpec((row_blk, HpWp), lambda i: (i, 0)),
        compiler_params=pltpu.CompilerParams(
            dimension_semantics=("parallel",),            # megacore-shardable
            vmem_limit_bytes=vmem_limit,
        ),
    )(x2d, pool_mat)

    # out.view(out.size(0), -1): (N*C, Hp*Wp) -> (N, C*Hp*Wp) is a free view
    # (row order is already (n, c, hp, wp)).
    return pooled.reshape(N, C * HpWp)


def _reference(x):
    r = jnp.maximum(x, 0.0)
    N, C, H, W = r.shape
    Hp, Wp = H // POOL, W // POOL
    r = r[:, :, : Hp * POOL, : Wp * POOL]
    pooled = r.reshape(N, C, Hp, POOL, Wp, POOL).mean(axis=(3, 5))
    return pooled.reshape(N, -1)


if __name__ == "__main__":
    key = jax.random.PRNGKey(0)
    x = jax.random.normal(key, (2, 4, 16, 16), dtype=jnp.float32)

    out = reshape1_forward(x)
    jax.block_until_ready(out)

    ref = _reference(x)
    assert out.shape == ref.shape == (2, 4 * 4 * 4), out.shape
    assert jnp.allclose(out, ref, atol=1e-5, rtol=1e-5), "mismatch vs reference"

    print("KERNEL_OK")
</pallas_src>

<mosaic_0001>
module attributes {stable_mosaic.version = 11 : i64} {
  func.func @_relu_pool_kernel(%arg0: i32, %arg1: memref<8x256xf32, #tpu.memory_space<vmem>>, %arg2: memref<256x16xf32, #tpu.memory_space<vmem>>, %arg3: memref<8x16xf32, #tpu.memory_space<vmem>>) attributes {dimension_semantics = [#tpu.dimension_semantics<parallel>], iteration_bounds = array<i64: 1>, scalar_prefetch = 0 : i64, scratch_operands = 0 : i64, tpu.core_type = #tpu.core_type<tc>, window_params = [{transform_indices = @transform_0, window_bounds = array<i64: 8, 256>}, {pipeline_mode = #tpu.pipeline_mode<synchronous>, transform_indices = @transform_1, window_bounds = array<i64: 256, 16>}, {transform_indices = @transform_2, window_bounds = array<i64: 8, 16>}]} {
    %c0 = arith.constant 0 : index
    %c0_0 = arith.constant 0 : index
    %0 = vector.load %arg1[%c0, %c0_0] : memref<8x256xf32, #tpu.memory_space<vmem>>, vector<8x256xf32>
    %cst = arith.constant 0.000000e+00 : f32
    %1 = vector.broadcast %cst : f32 to vector<8x256xf32>
    %2 = arith.maximumf %0, %1 : vector<8x256xf32>
    %c0_1 = arith.constant 0 : index
    %c0_2 = arith.constant 0 : index
    %3 = vector.load %arg2[%c0_1, %c0_2] : memref<256x16xf32, #tpu.memory_space<vmem>>, vector<256x16xf32>
    %cst_3 = arith.constant dense<0.000000e+00> : vector<8x16xf32>
    %4 = tpu.matmul %2, %3, %cst_3 {dimension_numbers = #tpu.dot_dimension_numbers<[1], [0], [0], [1], [0, 0, 1, 1], [], []>} : vector<8x256xf32>, vector<256x16xf32>, vector<8x16xf32> -> vector<8x16xf32>
    %c0_4 = arith.constant 0 : index
    %c0_5 = arith.constant 0 : index
    %5 = vector.load %arg3[%c0_4, %c0_5] : memref<8x16xf32, #tpu.memory_space<vmem>>, vector<8x16xf32>
    tpu.vector_store %arg3[%c0_4, %c0_5], %4 {strides = array<i32>} : memref<8x16xf32, #tpu.memory_space<vmem>>, vector<8x16xf32>,
    return
  }
  func.func @transform_0(%arg0: i32) -> (i32, i32) {
    %c0_i32 = arith.constant 0 : i32
    %c0_i32_0 = arith.constant 0 : i32
    return %arg0, %c0_i32 : i32, i32
  }
  func.func @transform_1(%arg0: i32) -> (i32, i32) {
    %c0_i32 = arith.constant 0 : i32
    %c0_i32_0 = arith.constant 0 : i32
    %c0_i32_1 = arith.constant 0 : i32
    return %c0_i32, %c0_i32_0 : i32, i32
  }
  func.func @transform_2(%arg0: i32) -> (i32, i32) {
    %c0_i32 = arith.constant 0 : i32
    %c0_i32_0 = arith.constant 0 : i32
    return %arg0, %c0_i32 : i32, i32
  }
}

</mosaic_0001>

<bundles_post_ra>
// kernel: tpu_custom_call.1
= control target key start
LH: loop header
LB: loop body
LE: loop exit
PB: predicated region body
PF: predicated region fallthrough
CT: control target
= control target key end

     0   :  { %s356_s0 = inlined_call_operand.vmem [shape: f32[8,256], index: 0, kind: input, shape index: {}]   ;;  %s357_s1 = inlined_call_operand.vmem [shape: f32[256,16], index: 1, kind: input, shape index: {}]   ;;  %s358_s2 = inlined_call_operand.hbm [shape: f32[8,16], index: 2, kind: output, shape index: {}]  }
   0x1   :  { %v32_v0 = vld [vmem:[%s357_s1 + $0x80] sm:$0xff]  ;;  %v33_v1 = vld [vmem:[%s357_s1 + $0x88] sm:$0xff]  ;;  %v34_v5 = vld [vmem:[%s357_s1 + $0x90] sm:$0xff] }
   0x2   :  { %v16_v2 = vld [vmem:[%s357_s1] sm:$0xff]  ;;  %v169_v3 = vpack.c.bf16 %v33_v1, %v32_v0  ;;  %v17_v4 = vld [vmem:[%s357_s1 + $0x8] sm:$0xff]  ;;  %v35_v6 = vld [vmem:[%s357_s1 + $0x98] sm:$0xff] }
   0x3   :  { %v171_v7 = vpack.c.bf16 %v17_v4, %v16_v2  ;;  %v173_v8 = vpack.c.bf16 %v35_v6, %v34_v5  ;;  %v18_v9 = vld [vmem:[%s357_s1 + $0x10] sm:$0xff]  ;;  %v19_v10 = vld [vmem:[%s357_s1 + $0x18] sm:$0xff]  ;;  %v36_v11 = vld [vmem:[%s357_s1 + $0xa0] sm:$0xff] }
   0x4   :  { %170 = vmatprep.subr.bf16.mxu0 %v169_v3  ;;  %v37_v12 = vld [vmem:[%s357_s1 + $0xa8] sm:$0xff]  ;;  %v175_v13 = vpack.c.bf16 %v19_v10, %v18_v9  ;;  %v20_v15 = vld [vmem:[%s357_s1 + $0x20] sm:$0xff]  ;;  %v38_v17 = vld [vmem:[%s357_s1 + $0xb0] sm:$0xff] }
   0x5   :  { %172 = vmatpush3.bf16.msra.mxu0 %v171_v7  ;;  %v177_v14 = vpack.c.bf16 %v37_v12, %v36_v11  ;;  %v21_v16 = vld [vmem:[%s357_s1 + $0x28] sm:$0xff]  ;;  %v39_v18 = vld [vmem:[%s357_s1 + $0xb8] sm:$0xff]  ;;  %v22_v21 = vld [vmem:[%s357_s1 + $0x30] sm:$0xff] }
   0x6   :  { %174 = vmatprep.subr.bf16.mxu0 %v173_v8  ;;  %v179_v19 = vpack.c.bf16 %v21_v16, %v20_v15  ;;  %v181_v20 = vpack.c.bf16 %v39_v18, %v38_v17  ;;  %v23_v22 = vld [vmem:[%s357_s1 + $0x38] sm:$0xff]  ;;  %v40_v23 = vld [vmem:[%s357_s1 + $0xc0] sm:$0xff]  ;;  %v41_v24 = vld [vmem:[%s357_s1 + $0xc8] sm:$0xff] }
   0x7   :  { %v13_v25 = vld [vmem:[%s356_s0 + $0x8] sm:$0xff] }
   0x8   :  { %v15_v26 = vmax.f32 %v13_v25, 0.0 }
   0x9   :  { %176 = vmatpush3.bf16.msra.mxu0 %v175_v13 }
   0xa   :  { %178 = vmatprep.subr.bf16.mxu0 %v177_v14 }
   0xb   :  { %7 = vsyncpa [#allocation3], 0  ;;  %v183_v27 = vpack.c.bf16 %v23_v22, %v22_v21  ;;  %v185_v28 = vpack.c.bf16 %v41_v24, %v40_v23  ;;  %v24_v29 = vld [vmem:[%s357_s1 + $0x40] sm:$0xff]  ;;  %v25_v30 = vld [vmem:[%s357_s1 + $0x48] sm:$0xff]  ;;  %112 = vmatprep.mubr.f32.mxu0 %v15_v26  ;;  %s226_s21 = smov [#allocation2]   ;;  %vm118_vm0 = vcmask 130048  }
   0xc   :  { %v42_v31 = vld [vmem:[%s357_s1 + $0xd0] sm:$0xff]  ;;  %v43_v32 = vld [vmem:[%s357_s1 + $0xd8] sm:$0xff]  ;;  %v187_v33 = vpack.c.bf16 %v25_v30, %v24_v29  ;;  %v44_v37 = vld [vmem:[%s357_s1 + $0xe0] sm:$0xff]  ;;  %s126_s22 = sshll.u32 %s226_s21, 4  ;;  %s127_s22 = int_to_ptr.vmem [resolvable:$true] %s126_s22 }
   0xd   :  { %180 = vmatpush3.bf16.msra.mxu0 %v179_v19  ;;  %v189_v34 = vpack.c.bf16 %v43_v32, %v42_v31  ;;  %v26_v35 = vld [vmem:[%s357_s1 + $0x50] sm:$0xff]  ;;  %v27_v36 = vld [vmem:[%s357_s1 + $0x58] sm:$0xff]  ;;  %v45_v38 = vld [vmem:[%s357_s1 + $0xe8] sm:$0xff]  ;;  %s202_s23 = scalar_lea.vmem %s127_s22, 128  ;;  %p207_p1 = scmp.lt.s32.totalorder %s127_s22, %s127_s22 }
   0xe   :  { %182 = vmatprep.subr.bf16.mxu0 %v181_v20  ;;  %v191_v39 = vpack.c.bf16 %v27_v36, %v26_v35  ;;  %v193_v40 = vpack.c.bf16 %v45_v38, %v44_v37  ;;  %v28_v41 = vld [vmem:[%s357_s1 + $0x60] sm:$0xff]  ;;  %v29_v42 = vld [vmem:[%s357_s1 + $0x68] sm:$0xff]  ;;  %v46_v43 = vld [vmem:[%s357_s1 + $0xf0] sm:$0xff]  ;;  %p203_p0 = scmp.ne.s32.totalorder %s127_s22, %s202_s23  ;;  %p208_p2 = scmp.lt.s32.totalorder %s202_s23, %s202_s23 }
   0xf   :  { %v47_v44 = vld [vmem:[%s357_s1 + $0xf8] sm:$0xff]  ;;  %v195_v45 = vpack.c.bf16 %v29_v42, %v28_v41  ;;  %v30_v47 = vld [vmem:[%s357_s1 + $0x70] sm:$0xff]  ;;  %v12_v50 = vld [vmem:[%s356_s0] sm:$0xff] }
  0x10   :  { %v197_v46 = vpack.c.bf16 %v47_v44, %v46_v43  ;;  %v31_v48 = vld [vmem:[%s357_s1 + $0x78] sm:$0xff]  ;;  %v14_v51 = vmax.f32 %v12_v50, 0.0  ;;  %p209_p3 = por %p208_p2, %p207_p1 }
  0x11   :  { %184 = vmatpush3.bf16.msra.mxu0 %v183_v27  ;;  %v199_v49 = vpack.c.bf16 %v31_v48, %v30_v47 }
  0x12   :  { %186 = vmatprep.subr.bf16.mxu0 %v185_v28  ;;  %p210_p4 = pnand %p209_p3, %p203_p0 }
  0x15   :  { %188 = vmatpush3.bf16.msra.mxu0 %v187_v33 }
  0x16   :  { %190 = vmatprep.subr.bf16.mxu0 %v189_v34 }
  0x19   :  { %192 = vmatpush3.bf16.msra.mxu0 %v191_v39 }
  0x1a   :  { %194 = vmatprep.subr.bf16.mxu0 %v193_v40 }
  0x1d   :  { %196 = vmatpush3.bf16.msra.mxu0 %v195_v45 }
  0x1e   :  { %198 = vmatprep.subr.bf16.mxu0 %v197_v46 }
  0x21   :  { %200 = vmatpush3.bf16.msra.mxu0 %v199_v49 }
  0x24   :  { %113 = vmatmul.mubr.f32.vlgmr.msra.gmra.mrb[0].mxu0 %v14_v51 }
  0xf7   :  { %v166_v52 = vpop.f32.mrb[0].mxu0 }
  0xf8   :  { %v167_v53 = vpop.f32.mrb[1].mxu0 }
  0xf9   :  { %v168_v54 = vadd.f32 %v167_v53, %v166_v52 }
  0xfb   :  { %119 = vst.msk [vmem:[#allocation2] sm:$0xff] %vm118_vm0, %v168_v54 }
  0xfc   :  { %213 = shalt.err (!%p210_p4)
}
  0xfd   :  { %s214_s24 = scalar_lea.hbm %s358_s2, 128 }
  0xfe   :  { %p215_p5 = scmp.ne.s32.totalorder %s358_s2, %s214_s24  ;;  %p218_p6 = scmp.lt.u32.totalorder %s214_s24, %s358_s2 }
 0x100   :  { %p220_p7 = pnand %p218_p6, %p215_p5 }
 0x102   :  { %223 = shalt.err (!%p220_p7)
}
 0x103   :  { %129 = dma.vmem_to_hbm [thread:$0]  %s127_s22, 128, %s358_s2, [#allocation3]  }
 0x104   :  { %224 = dma.done.wait [#allocation3], 128  }
 0x105   :  { %225 = vsyncadd [#allocation3], 4294967168 }
 0x106   :  { %133 = vsyncpa [#allocation3], 1 }

</bundles_post_ra>
